<compile_context>
chip_gen: v7x
topology: tpu7x:2x2x1
jax: 0.10.0
libtpu: 0.0.40
codegen_flags: <defaults>
</compile_context>

<pallas_src>
from functools import partial

import jax
import jax.numpy as jnp
from jax.experimental import pallas as pl
from jax.experimental.pallas import tpu as pltpu


def _round_up(x, m):
    return ((x + m - 1) // m) * m


def _pick_tm(n):
    """Batch-tile size: large MXU-friendly tiles for big batches, sublane-padded otherwise."""
    if n >= 512:
        return 512
    if n >= 256:
        return 256
    if n >= 128:
        return 128
    return _round_up(max(n, 1), 8)


def _pick_tn(f):
    """Output-column tile: full width when small / not 128-divisible, else tile for VMEM."""
    if f <= 2048 or f % 128 != 0:
        return f
    for cand in (2048, 1024, 512, 256, 128):
        if f % cand == 0:
            return cand
    return f


# -----------------------------------------------------------------------------
# Pallas kernel: fused dense (bf16 MXU) + 5x (1x1 conv) affine chain + exp/combine
# -----------------------------------------------------------------------------
def mnist_diffusion_kernel(x_ref, w_ref, bias_ref, scal_ref, out_ref):
    # x_ref    : (TM, K)   f32   flattened image tile (K = H*W)
    # w_ref    : (K, TN)   bf16  image rows of the dense weight (t-emb rows folded into bias)
    # bias_ref : (1, TN)   f32   dense bias + t_embedding @ W_emb   (precomputed per call)
    # scal_ref : (10,)     f32 SMEM  [w1,b1,w2,b2,w3,b3,w_mean,b_mean,w_cov,b_cov]
    # out_ref  : (TM, TN)  f32

    # Hoist all SMEM scalar reads up front (no repeated scalar->vreg splats in the tail).
    w1, b1 = scal_ref[0], scal_ref[1]
    w2, b2 = scal_ref[2], scal_ref[3]
    w3, b3 = scal_ref[4], scal_ref[5]
    w_m, b_m = scal_ref[6], scal_ref[7]
    # Fold the 0.5 of exp(0.5 * logcov) into the cov affine: 0.5*ReLU(z) == ReLU(0.5*z).
    w_c, b_c = 0.5 * scal_ref[8], 0.5 * scal_ref[9]

    # DiffusionDense: Linear + ReLU.  bf16 operands -> MXU peak, f32 accumulation.
    y = jnp.dot(
        x_ref[...].astype(jnp.bfloat16), w_ref[...],
        preferred_element_type=jnp.float32,
    )
    y = jnp.maximum(y + bias_ref[...], 0.0)

    # block1/2/3: single-channel 1x1 conv + ReLU == scalar affine + ReLU (kept in f32:
    # no bf16 VPU/EUP path on v5e).
    y = jnp.maximum(w1 * y + b1, 0.0)
    y = jnp.maximum(w2 * y + b2, 0.0)
    y = jnp.maximum(w3 * y + b3, 0.0)

    # block_mean / block_cov heads + combine.
    mean = jnp.maximum(w_m * y + b_m, 0.0)
    cov = jnp.exp(jnp.maximum(w_c * y + b_c, 0.0))     # exp runs on the EUP slot
    out_ref[...] = mean + y * cov


# -----------------------------------------------------------------------------
# Wrapper (glue: embedding gather, t-emb fold into bias, flatten, pad, reshape)
# -----------------------------------------------------------------------------
@partial(jax.jit, static_argnames=("img_size",))
def mnist_diffusion_forward(x, t, params, img_size):
    """x: (N, 1, H, W) float32 NCHW, t: (1,) int32 timestep index."""
    H, W = img_size
    N = x.shape[0]
    F = H * W              # flattened_image_size
    K = F                  # contraction dim after folding the t-emb rows into the bias

    dense_w = params["dense_w"]          # ((H+1)*W, F) f32
    dense_b = params["dense_b"]          # (1, F)       f32

    # Fold the time-embedding contribution into a (1, F) bias row — removes the HBM
    # materialization of the concatenated tensor and makes K a multiple of 128.
    t_emb = params["embedding"][t[0]]                                        # (W,)
    bias_eff = (dense_b + t_emb[None, :] @ dense_w[:W, :]).astype(jnp.float32)  # (1, F)
    w_img = dense_w[W:, :].astype(jnp.bfloat16)                              # (K, F) bf16

    # Flatten NCHW (C=1) and pad batch to a sublane/MXU-friendly tile.
    x_flat = x.reshape(N, F).astype(jnp.float32)
    tm = _pick_tm(N)
    n_pad = _round_up(N, tm)
    if n_pad != N:
        x_flat = jnp.pad(x_flat, ((0, n_pad - N), (0, 0)))

    tn = _pick_tn(F)
    grid = (n_pad // tm, F // tn)

    cost = pl.CostEstimate(
        flops=2 * n_pad * K * F + 14 * n_pad * F,
        transcendentals=n_pad * F,
        bytes_accessed=n_pad * K * 4 + K * F * 2 + F * 4 + n_pad * F * 4,
    )

    out_flat = pl.pallas_call(
        mnist_diffusion_kernel,
        out_shape=jax.ShapeDtypeStruct((n_pad, F), jnp.float32),
        grid=grid,
        in_specs=[
            pl.BlockSpec((tm, K), lambda i, j: (i, 0)),             # x tile: resident across j
            pl.BlockSpec((K, tn), lambda i, j: (0, j)),             # weight column tile
            pl.BlockSpec((1, tn), lambda i, j: (0, j)),             # effective bias
            pl.BlockSpec(memory_space=pltpu.MemorySpace.SMEM),      # conv scalars
        ],
        out_specs=pl.BlockSpec((tm, tn), lambda i, j: (i, j)),
        compiler_params=pltpu.CompilerParams(
            dimension_semantics=("parallel", "parallel"),   # both axes -> both TCs on v7x
        ),
        cost_estimate=cost,
    )(x_flat, w_img, bias_eff, params["block_scalars"])

    return out_flat[:N].reshape(N, 1, H, W)


# -----------------------------------------------------------------------------
# Pure-JAX reference (same interpretation of the torch module), for verification
# -----------------------------------------------------------------------------
def mnist_diffusion_reference(x, t, params, img_size):
    H, W = img_size
    N = x.shape[0]
    E = (H + 1) * W
    t_emb = params["embedding"][t[0]]
    t_emb_b = jnp.broadcast_to(t_emb[None, None, None, :], (N, 1, 1, W))
    x_cat = jnp.concatenate([t_emb_b, x], axis=2).reshape(N, E)
    y = jnp.maximum(x_cat @ params["dense_w"] + params["dense_b"], 0.0)
    s = params["block_scalars"]
    for k in range(3):
        y = jnp.maximum(s[2 * k] * y + s[2 * k + 1], 0.0)
    mean = jnp.maximum(s[6] * y + s[7], 0.0)
    logcov = jnp.maximum(s[8] * y + s[9], 0.0)
    cov = jnp.exp(0.5 * logcov)
    return (mean + y * cov).reshape(N, 1, H, W)


# -----------------------------------------------------------------------------
# Deterministic parameter init (synthetic, no checkpoint)
# -----------------------------------------------------------------------------
def init_params(key, img_size, timesteps):
    H, W = img_size
    E = (H + 1) * W
    F = H * W
    k = jax.random.split(key, 4)
    return {
        # nn.Embedding(timesteps, W)
        "embedding": jax.random.normal(k[0], (timesteps, W), jnp.float32) * 0.1,
        # DiffusionDense: Linear(E -> F), stored as (E, F) so kernel does x @ W
        "dense_w": jax.random.normal(k[1], (E, F), jnp.float32) * 0.05,
        "dense_b": jax.random.normal(k[2], (1, F), jnp.float32) * 0.05,
        # 5 DiffusionBlocks (1x1 conv, 1 channel): [w1,b1,w2,b2,w3,b3,wm,bm,wc,bc]
        "block_scalars": jax.random.normal(k[3], (10,), jnp.float32) * 0.2,
    }


if __name__ == "__main__":
    img_size = (16, 16)     # small MNIST-like spatial size
    timesteps = 10
    batch = 2

    key = jax.random.PRNGKey(0)
    kp, kx, kt = jax.random.split(key, 3)

    params = init_params(kp, img_size, timesteps)
    x = jax.random.normal(kx, (batch, 1, img_size[0], img_size[1]), jnp.float32)
    t = jax.random.randint(kt, (1,), 0, timesteps, jnp.int32)

    out = mnist_diffusion_forward(x, t, params, img_size)
    out = jax.block_until_ready(out)

    assert out.shape == (batch, 1, img_size[0], img_size[1])
    assert jnp.all(jnp.isfinite(out))

    # Loose tolerance: kernel uses bf16 matmul operands, reference is all-f32.
    ref = mnist_diffusion_reference(x, t, params, img_size)
    assert jnp.allclose(out, ref, rtol=5e-2, atol=5e-2)

    print("KERNEL_OK")
</pallas_src>

<mosaic_0001>
module attributes {stable_mosaic.version = 11 : i64} {
  func.func @mnist_diffusion_kernel(%arg0: i32, %arg1: i32, %arg2: memref<8x256xf32, #tpu.memory_space<vmem>>, %arg3: memref<256x256xbf16, #tpu.memory_space<vmem>>, %arg4: memref<1x256xf32, #tpu.memory_space<vmem>>, %arg5: memref<10xf32, #tpu.memory_space<smem>>, %arg6: memref<8x256xf32, #tpu.memory_space<vmem>>) attributes {dimension_semantics = [#tpu.dimension_semantics<parallel>, #tpu.dimension_semantics<parallel>], iteration_bounds = array<i64: 1, 1>, scalar_prefetch = 0 : i64, scratch_operands = 0 : i64, tpu.core_type = #tpu.core_type<tc>, window_params = [{transform_indices = @transform_0, window_bounds = array<i64: 8, 256>}, {transform_indices = @transform_1, window_bounds = array<i64: 256, 256>}, {transform_indices = @transform_2, window_bounds = array<i64: 1, 256>}, {transform_indices = @transform_3, window_bounds = array<i64: 10>}, {transform_indices = @transform_4, window_bounds = array<i64: 8, 256>}]} {
    %c0 = arith.constant 0 : index
    %0 = memref.load %arg5[%c0] : memref<10xf32, #tpu.memory_space<smem>>
    %c1 = arith.constant 1 : index
    %1 = memref.load %arg5[%c1] : memref<10xf32, #tpu.memory_space<smem>>
    %c2 = arith.constant 2 : index
    %2 = memref.load %arg5[%c2] : memref<10xf32, #tpu.memory_space<smem>>
    %c3 = arith.constant 3 : index
    %3 = memref.load %arg5[%c3] : memref<10xf32, #tpu.memory_space<smem>>
    %c4 = arith.constant 4 : index
    %4 = memref.load %arg5[%c4] : memref<10xf32, #tpu.memory_space<smem>>
    %c5 = arith.constant 5 : index
    %5 = memref.load %arg5[%c5] : memref<10xf32, #tpu.memory_space<smem>>
    %c6 = arith.constant 6 : index
    %6 = memref.load %arg5[%c6] : memref<10xf32, #tpu.memory_space<smem>>
    %c7 = arith.constant 7 : index
    %7 = memref.load %arg5[%c7] : memref<10xf32, #tpu.memory_space<smem>>
    %c8 = arith.constant 8 : index
    %8 = memref.load %arg5[%c8] : memref<10xf32, #tpu.memory_space<smem>>
    %cst = arith.constant 5.000000e-01 : f32
    %9 = arith.mulf %cst, %8 : f32
    %c9 = arith.constant 9 : index
    %10 = memref.load %arg5[%c9] : memref<10xf32, #tpu.memory_space<smem>>
    %cst_0 = arith.constant 5.000000e-01 : f32
    %11 = arith.mulf %cst_0, %10 : f32
    %c0_1 = arith.constant 0 : index
    %c0_2 = arith.constant 0 : index
    %12 = vector.load %arg2[%c0_1, %c0_2] : memref<8x256xf32, #tpu.memory_space<vmem>>, vector<8x256xf32>
    %13 = arith.truncf %12 : vector<8x256xf32> to vector<8x256xbf16>
    %c0_3 = arith.constant 0 : index
    %c0_4 = arith.constant 0 : index
    %14 = vector.load %arg3[%c0_3, %c0_4] : memref<256x256xbf16, #tpu.memory_space<vmem>>, vector<256x256xbf16>
    %cst_5 = arith.constant dense<0.000000e+00> : vector<8x256xf32>
    %15 = tpu.matmul %13, %14, %cst_5 {dimension_numbers = #tpu.dot_dimension_numbers<[1], [0], [0], [1], [0, 0, 1, 1], [], []>} : vector<8x256xbf16>, vector<256x256xbf16>, vector<8x256xf32> -> vector<8x256xf32>
    %c0_6 = arith.constant 0 : index
    %c0_7 = arith.constant 0 : index
    %16 = vector.load %arg4[%c0_6, %c0_7] : memref<1x256xf32, #tpu.memory_space<vmem>>, vector<1x256xf32>
    %17 = vector.broadcast %16 : vector<1x256xf32> to vector<8x256xf32>
    %18 = arith.addf %15, %17 : vector<8x256xf32>
    %cst_8 = arith.constant 0.000000e+00 : f32
    %19 = vector.broadcast %cst_8 : f32 to vector<8x256xf32>
    %20 = arith.maximumf %18, %19 : vector<8x256xf32>
    %21 = vector.broadcast %0 : f32 to vector<8x256xf32>
    %22 = arith.mulf %21, %20 : vector<8x256xf32>
    %23 = vector.broadcast %1 : f32 to vector<8x256xf32>
    %24 = arith.addf %22, %23 : vector<8x256xf32>
    %cst_9 = arith.constant 0.000000e+00 : f32
    %25 = vector.broadcast %cst_9 : f32 to vector<8x256xf32>
    %26 = arith.maximumf %24, %25 : vector<8x256xf32>
    %27 = vector.broadcast %2 : f32 to vector<8x256xf32>
    %28 = arith.mulf %27, %26 : vector<8x256xf32>
    %29 = vector.broadcast %3 : f32 to vector<8x256xf32>
    %30 = arith.addf %28, %29 : vector<8x256xf32>
    %cst_10 = arith.constant 0.000000e+00 : f32
    %31 = vector.broadcast %cst_10 : f32 to vector<8x256xf32>
    %32 = arith.maximumf %30, %31 : vector<8x256xf32>
    %33 = vector.broadcast %4 : f32 to vector<8x256xf32>
    %34 = arith.mulf %33, %32 : vector<8x256xf32>
    %35 = vector.broadcast %5 : f32 to vector<8x256xf32>
    %36 = arith.addf %34, %35 : vector<8x256xf32>
    %cst_11 = arith.constant 0.000000e+00 : f32
    %37 = vector.broadcast %cst_11 : f32 to vector<8x256xf32>
    %38 = arith.maximumf %36, %37 : vector<8x256xf32>
    %39 = vector.broadcast %6 : f32 to vector<8x256xf32>
    %40 = arith.mulf %39, %38 : vector<8x256xf32>
    %41 = vector.broadcast %7 : f32 to vector<8x256xf32>
    %42 = arith.addf %40, %41 : vector<8x256xf32>
    %cst_12 = arith.constant 0.000000e+00 : f32
    %43 = vector.broadcast %cst_12 : f32 to vector<8x256xf32>
    %44 = arith.maximumf %42, %43 : vector<8x256xf32>
    %45 = vector.broadcast %9 : f32 to vector<8x256xf32>
    %46 = arith.mulf %45, %38 : vector<8x256xf32>
    %47 = vector.broadcast %11 : f32 to vector<8x256xf32>
    %48 = arith.addf %46, %47 : vector<8x256xf32>
    %cst_13 = arith.constant 0.000000e+00 : f32
    %49 = vector.broadcast %cst_13 : f32 to vector<8x256xf32>
    %50 = arith.maximumf %48, %49 : vector<8x256xf32>
    %51 = math.exp %50 : vector<8x256xf32>
    %52 = arith.mulf %38, %51 : vector<8x256xf32>
    %53 = arith.addf %44, %52 : vector<8x256xf32>
    %c0_14 = arith.constant 0 : index
    %c0_15 = arith.constant 0 : index
    %54 = vector.load %arg6[%c0_14, %c0_15] : memref<8x256xf32, #tpu.memory_space<vmem>>, vector<8x256xf32>
    tpu.vector_store %arg6[%c0_14, %c0_15], %53 {strides = array<i32>} : memref<8x256xf32, #tpu.memory_space<vmem>>, vector<8x256xf32>,
    return
  }
  func.func @transform_0(%arg0: i32, %arg1: i32) -> (i32, i32) {
    %c0_i32 = arith.constant 0 : i32
    %c0_i32_0 = arith.constant 0 : i32
    return %arg0, %c0_i32 : i32, i32
  }
  func.func @transform_1(%arg0: i32, %arg1: i32) -> (i32, i32) {
    %c0_i32 = arith.constant 0 : i32
    %c0_i32_0 = arith.constant 0 : i32
    return %c0_i32, %arg1 : i32, i32
  }
  func.func @transform_2(%arg0: i32, %arg1: i32) -> (i32, i32) {
    %c0_i32 = arith.constant 0 : i32
    %c0_i32_0 = arith.constant 0 : i32
    return %c0_i32, %arg1 : i32, i32
  }
  func.func @transform_3(%arg0: i32, %arg1: i32) -> i32 {
    %c0_i32 = arith.constant 0 : i32
    %c0_i32_0 = arith.constant 0 : i32
    return %c0_i32 : i32
  }
  func.func @transform_4(%arg0: i32, %arg1: i32) -> (i32, i32) {
    %c0_i32 = arith.constant 0 : i32
    return %arg0, %arg1 : i32, i32
  }
}

</mosaic_0001>

<bundles_post_ra>
// kernel: mnist_diffusion_forward.1
= control target key start
LH: loop header
LB: loop body
LE: loop exit
PB: predicated region body
PF: predicated region fallthrough
CT: control target
= control target key end

     0   :  { %9 = vsyncpa [#allocation3], 0  ;;  %s596_s0 = inlined_call_operand.vmem [shape: f32[8,256], index: 0, kind: input, shape index: {}]   ;;  %s597_s1 = inlined_call_operand.vmem [shape: bf16[256,256], index: 1, kind: input, shape index: {}]   ;;  %s598_s2 = inlined_call_operand.vmem [shape: f32[1,256], index: 2, kind: input, shape index: {}]   ;;  %s599_s3 = inlined_call_operand.vmem [shape: f32[10], index: 3, kind: input, shape index: {}]   ;;  %s600_s4 = inlined_call_operand.vmem [shape: f32[8,256], index: 4, kind: output, shape index: {}]  }
   0x1   :  { %s22_s17 = sshll.u32 %s599_s3, 4  ;;  %s23_s17 = int_to_ptr.vmem [resolvable:$true] %s22_s17 }
   0x2   :  { %s442_s18 = scalar_lea.vmem %s23_s17, 16  ;;  %p447_p1 = scmp.lt.s32.totalorder %s23_s17, %s23_s17 }
   0x3   :  { %p443_p0 = scmp.ne.s32.totalorder %s23_s17, %s442_s18  ;;  %p448_p2 = scmp.lt.s32.totalorder %s442_s18, %s442_s18 }
   0x5   :  { %p449_p3 = por %p448_p2, %p447_p1 }
   0x7   :  { %p450_p4 = pnand %p449_p3, %p443_p0 }
   0x9   :  { %453 = shalt.err (!%p450_p4)
}
   0xa   :  { %s456_s19 = smov [#allocation2]  }
   0xb   :  { %25 = dma.vmem_to_smem %s23_s17, 16, %s456_s19, [#allocation3]  }
   0xc   :  { %454 = dma.done.wait [#allocation3], 16  }
   0xd   :  { %455 = vsyncadd [#allocation3], 4294967280 }
   0xe   :  { %29 = sfence }
   0xf   :  { %v390_v0 = vld [vmem:[%s597_s1 + $0x4] ss:$8 sps:$4 sm:$0xff]   ;;  %v392_v1 = vld [vmem:[%s597_s1] ss:$8 sps:$4 sm:$0xff]   ;;  %v393_v2 = vld [vmem:[%s597_s1 + $0x14] ss:$8 sps:$4 sm:$0xff]   ;;  %v80_v36 = vlaneseq }
  0x10   :  { %250 = vmatprep.subr.bf16.mxu0 %v390_v0  ;;  %v395_v3 = vld [vmem:[%s597_s1 + $0x10] ss:$8 sps:$4 sm:$0xff]   ;;  %v396_v4 = vld [vmem:[%s597_s1 + $0x24] ss:$8 sps:$4 sm:$0xff]   ;;  %v398_v5 = vld [vmem:[%s597_s1 + $0x20] ss:$8 sps:$4 sm:$0xff]  }
  0x11   :  { %251 = vmatpush1.bf16.msra.mxu0 %v392_v1  ;;  %v399_v6 = vld [vmem:[%s597_s1 + $0x34] ss:$8 sps:$4 sm:$0xff]   ;;  %v401_v7 = vld [vmem:[%s597_s1 + $0x30] ss:$8 sps:$4 sm:$0xff]   ;;  %v402_v8 = vld [vmem:[%s597_s1 + $0x44] ss:$8 sps:$4 sm:$0xff]  }
  0x12   :  { %252 = vmatprep.subr.bf16.mxu0 %v393_v2  ;;  %v404_v9 = vld [vmem:[%s597_s1 + $0x40] ss:$8 sps:$4 sm:$0xff]   ;;  %v405_v10 = vld [vmem:[%s597_s1 + $0x54] ss:$8 sps:$4 sm:$0xff]   ;;  %v407_v11 = vld [vmem:[%s597_s1 + $0x50] ss:$8 sps:$4 sm:$0xff]  }
  0x13   :  { %v408_v12 = vld [vmem:[%s597_s1 + $0x64] ss:$8 sps:$4 sm:$0xff]   ;;  %v410_v15 = vld [vmem:[%s597_s1 + $0x60] ss:$8 sps:$4 sm:$0xff]   ;;  %v411_v16 = vld [vmem:[%s597_s1 + $0x74] ss:$8 sps:$4 sm:$0xff]  }
  0x14   :  { %v43_v13 = vld [vmem:[%s596_s0 + $0x8] sm:$0xff]  ;;  %v413_v17 = vld [vmem:[%s597_s1 + $0x70] ss:$8 sps:$4 sm:$0xff]   ;;  %v417_v20 = vld [vmem:[%s597_s1 + $0x94] ss:$8 sps:$4 sm:$0xff]   ;;  %v81_v37 = vshrl.u32 %v80_v36, 7 }
  0x15   :  { %253 = vmatpush1.bf16.msra.mxu0 %v395_v3  ;;  %v45_v14 = vpack.c.bf16 %v43_v13, %v43_v13  ;;  %v414_v18 = vld [vmem:[%s597_s1 + $0x84] ss:$8 sps:$4 sm:$0xff]   ;;  %v416_v19 = vld [vmem:[%s597_s1 + $0x80] ss:$8 sps:$4 sm:$0xff]   ;;  %v419_v21 = vld [vmem:[%s597_s1 + $0x90] ss:$8 sps:$4 sm:$0xff]  }
  0x16   :  { %254 = vmatprep.subr.bf16.mxu0 %v396_v4  ;;  %v420_v22 = vld [vmem:[%s597_s1 + $0xa4] ss:$8 sps:$4 sm:$0xff]   ;;  %v422_v23 = vld [vmem:[%s597_s1 + $0xa0] ss:$8 sps:$4 sm:$0xff]   ;;  %v423_v24 = vld [vmem:[%s597_s1 + $0xb4] ss:$8 sps:$4 sm:$0xff]  }
  0x17   :  { %282 = vmatprep.mubr.bf16.mxu0 %v45_v14  ;;  %v425_v25 = vld [vmem:[%s597_s1 + $0xb0] ss:$8 sps:$4 sm:$0xff]   ;;  %v426_v26 = vld [vmem:[%s597_s1 + $0xc4] ss:$8 sps:$4 sm:$0xff]   ;;  %v428_v27 = vld [vmem:[%s597_s1 + $0xc0] ss:$8 sps:$4 sm:$0xff]  }
  0x18   :  { %v429_v28 = vld [vmem:[%s597_s1 + $0xd4] ss:$8 sps:$4 sm:$0xff]   ;;  %v431_v29 = vld [vmem:[%s597_s1 + $0xd0] ss:$8 sps:$4 sm:$0xff]   ;;  %v432_v30 = vld [vmem:[%s597_s1 + $0xe4] ss:$8 sps:$4 sm:$0xff]  }
  0x19   :  { %255 = vmatpush1.bf16.msra.mxu0 %v398_v5  ;;  %v434_v31 = vld [vmem:[%s597_s1 + $0xe0] ss:$8 sps:$4 sm:$0xff]   ;;  %v435_v32 = vld [vmem:[%s597_s1 + $0xf4] ss:$8 sps:$4 sm:$0xff]   ;;  %v437_v33 = vld [vmem:[%s597_s1 + $0xf0] ss:$8 sps:$4 sm:$0xff]  }
  0x1a   :  { %256 = vmatprep.subr.bf16.mxu0 %v399_v6  ;;  %v42_v34 = vld [vmem:[%s596_s0] sm:$0xff]  ;;  %v82_v38 = vsub.s32 0, %v81_v37  ;;  %s30_s7 = sld [smem:[#allocation2]]  ;;  %v86_v40 = vsub.s32 1, %v81_v37  ;;  %s348_s10 = sld [smem:[#allocation2 + $0x1]] }
  0x1b   :  { %v44_v35 = vpack.c.bf16 %v42_v34, %v42_v34  ;;  %v78_v39 = vld [vmem:[%s598_s2] sm:$0x3]  ;;  %s349_s1 = sld [smem:[#allocation2 + $0x2]]  ;;  %s350_s0 = sld [smem:[#allocation2 + $0x3]] }
  0x1c   :  { %v83_v41 = vrot.slane %v78_v39, %v82_v38  ;;  %v87_v42 = vrot.slane %v78_v39, %v86_v40  ;;  %s351_s11 = sld [smem:[#allocation2 + $0x4]]  ;;  %s352_s2 = sld [smem:[#allocation2 + $0x5]] }
  0x1d   :  { %257 = vmatpush1.bf16.msra.mxu0 %v401_v7  ;;  %s355_s12 = sld [smem:[#allocation2 + $0x8]]  ;;  %s356_s13 = sld [smem:[#allocation2 + $0x9]] }
  0x1e   :  { %258 = vmatprep.subr.bf16.mxu0 %v402_v8  ;;  %s353_s16 = sld [smem:[#allocation2 + $0x6]]  ;;  %s354_s17 = sld [smem:[#allocation2 + $0x7]] }
  0x20   :  { %v293_v46 = vstv %s30_s7  ;;  %v296_v51 = vstv %s348_s10 }
  0x21   :  { %259 = vmatpush1.bf16.msra.mxu0 %v404_v9  ;;  %v301_v56 = vstv %s349_s1  ;;  %v304_v59 = vstv %s350_s0 }
  0x22   :  { %260 = vmatprep.subr.bf16.mxu0 %v405_v10  ;;  %v309_v0 = vstv %s351_s11  ;;  %v312_v3 = vstv %s352_s2 }
  0x23   :  { %s39_s14 = smul.f32 0.5, %s355_s12 }
  0x24   :  { %s41_s15 = smul.f32 0.5, %s356_s13 }
  0x25   :  { %261 = vmatpush1.bf16.msra.mxu0 %v407_v11  ;;  %v325_v8 = vstv %s39_s14 }
  0x26   :  { %262 = vmatprep.subr.bf16.mxu0 %v408_v12  ;;  %v328_v11 = vstv %s41_s15 }
  0x29   :  { %263 = vmatpush1.bf16.msra.mxu0 %v410_v15 }
  0x2a   :  { %264 = vmatprep.subr.bf16.mxu0 %v411_v16 }
  0x2d   :  { %265 = vmatpush1.bf16.msra.mxu0 %v413_v17 }
  0x2e   :  { %266 = vmatprep.subr.bf16.mxu0 %v414_v18 }
  0x31   :  { %267 = vmatpush1.bf16.msra.mxu0 %v416_v19 }
  0x32   :  { %268 = vmatprep.subr.bf16.mxu0 %v417_v20 }
  0x35   :  { %269 = vmatpush1.bf16.msra.mxu0 %v419_v21  ;;  %v317_v21 = vstv %s353_s16 }
  0x36   :  { %270 = vmatprep.subr.bf16.mxu0 %v420_v22 }
  0x39   :  { %271 = vmatpush1.bf16.msra.mxu0 %v422_v23  ;;  %v320_v23 = vstv %s354_s17 }
  0x3a   :  { %272 = vmatprep.subr.bf16.mxu0 %v423_v24 }
  0x3d   :  { %273 = vmatpush1.bf16.msra.mxu0 %v425_v25 }
  0x3e   :  { %274 = vmatprep.subr.bf16.mxu0 %v426_v26 }
  0x41   :  { %275 = vmatpush1.bf16.msra.mxu0 %v428_v27 }
  0x42   :  { %276 = vmatprep.subr.bf16.mxu0 %v429_v28 }
  0x45   :  { %277 = vmatpush1.bf16.msra.mxu0 %v431_v29 }
  0x46   :  { %278 = vmatprep.subr.bf16.mxu0 %v432_v30 }
  0x49   :  { %279 = vmatpush1.bf16.msra.mxu0 %v434_v31 }
  0x4a   :  { %280 = vmatprep.subr.bf16.mxu0 %v435_v32 }
  0x4d   :  { %281 = vmatpush1.bf16.msra.mxu0 %v437_v33 }
  0x50   :  { %283 = vmatmul.mubr.bf16.vlgmr.msra.gmra.mrb[0].mxu0 %v44_v35 }
 0x123   :  { %v284_v43 = vpop.f32.mrb[0].mxu0 }
 0x124   :  { %v285_v44 = vadd.f32 %v284_v43, %v83_v41  ;;  %v286_v45 = vpop.f32.mrb[1].mxu0 }
 0x125   :  { %v287_v47 = vadd.f32 %v286_v45, %v87_v42  ;;  %v288_v48 = vpop.f32.mrb[2].mxu0 }
 0x126   :  { %v291_v49 = vmax.f32 %v285_v44, 0.0  ;;  %v289_v50 = vpop.f32.mrb[3].mxu0 }
 0x127   :  { %v292_v52 = vmax.f32 %v287_v47, 0.0 }
 0x128   :  { %v294_v53 = vmul.f32 %v293_v46, %v291_v49 }
 0x129   :  { %v295_v54 = vmul.f32 %v293_v46, %v292_v52 }
 0x12a   :  { %v297_v55 = vadd.f32 %v296_v51, %v294_v53 }
 0x12b   :  { %v298_v57 = vadd.f32 %v296_v51, %v295_v54 }
 0x12c   :  { %v299_v58 = vmax.f32 %v297_v55, 0.0 }
 0x12d   :  { %v300_v60 = vmax.f32 %v298_v57, 0.0 }
 0x12e   :  { %v302_v61 = vmul.f32 %v301_v56, %v299_v58 }
 0x12f   :  { %v303_v62 = vmul.f32 %v301_v56, %v300_v60 }
 0x130   :  { %v305_v63 = vadd.f32 %v304_v59, %v302_v61 }
 0x131   :  { %v306_v1 = vadd.f32 %v304_v59, %v303_v62 }
 0x132   :  { %v307_v2 = vmax.f32 %v305_v63, 0.0 }
 0x133   :  { %v308_v4 = vmax.f32 %v306_v1, 0.0 }
 0x134   :  { %v310_v5 = vmul.f32 %v309_v0, %v307_v2 }
 0x135   :  { %v311_v6 = vmul.f32 %v309_v0, %v308_v4 }
 0x136   :  { %v313_v7 = vadd.f32 %v312_v3, %v310_v5 }
 0x137   :  { %v314_v9 = vadd.f32 %v312_v3, %v311_v6 }
 0x138   :  { %v315_v10 = vmax.f32 %v313_v7, 0.0 }
 0x139   :  { %v316_v12 = vmax.f32 %v314_v9, 0.0 }
 0x13a   :  { %v326_v13 = vmul.f32 %v325_v8, %v315_v10  ;;  %v318_v22 = vmul.f32 %v317_v21, %v315_v10 }
 0x13b   :  { %v327_v14 = vmul.f32 %v325_v8, %v316_v12  ;;  %v319_v24 = vmul.f32 %v317_v21, %v316_v12 }
 0x13c   :  { %v329_v15 = vadd.f32 %v328_v11, %v326_v13  ;;  %v321_v25 = vadd.f32 %v320_v23, %v318_v22 }
 0x13d   :  { %v330_v16 = vadd.f32 %v328_v11, %v327_v14  ;;  %v322_v26 = vadd.f32 %v320_v23, %v319_v24 }
 0x13e   :  { %v331_v17 = vmax.f32 %v329_v15, 0.0  ;;  %v323_v29 = vmax.f32 %v321_v25, 0.0 }
 0x13f   :  { %v332_v18 = vmax.f32 %v330_v16, 0.0  ;;  %v324_v31 = vmax.f32 %v322_v26, 0.0 }
 0x140   :  { %v333_v19 = vmul.f32 1.442695, %v331_v17 }
 0x141   :  { %v335_v20 = vmul.f32 1.442695, %v332_v18 }
 0x142   :  { %438 = vpow2.f32 %v333_v19 }
 0x143   :  { %440 = vpow2.f32 %v335_v20 }
 0x14c   :  { %v439_v27 = vpop.eup %438 }
 0x14d   :  { %v441_v28 = vpop.eup %440  ;;  %v337_v30 = vmul.f32 %v439_v27, %v315_v10 }
 0x14e   :  { %v338_v32 = vmul.f32 %v441_v28, %v316_v12 }
 0x14f   :  { %v339_v33 = vadd.f32 %v337_v30, %v323_v29 }
 0x150   :  { %v340_v34 = vadd.f32 %v338_v32, %v324_v31 }
 0x151   :  { %341 = vst [vmem:[%s600_s4] sm:$0xff] %v339_v33 }
 0x152   :  { %342 = vst [vmem:[%s600_s4 + $0x8] sm:$0xff] %v340_v34 }
 0x153   :  { %347 = vsyncpa [#allocation3], 1 }

</bundles_post_ra>
